<compile_context>
chip_gen: v7x
topology: tpu7x:2x2x1
jax: 0.10.0
libtpu: 0.0.40
codegen_flags: <defaults>
</compile_context>

<pallas_src>
import math
import functools

import jax
import jax.numpy as jnp
from jax import lax
from jax.experimental import pallas as pl
from jax.experimental.pallas import tpu as pltpu


def _sdpa_kernel(q_ref, k_ref, v_ref, *rest, scale, has_mask):
    if has_mask:
        mask_ref, x_ref, att_ref = rest
    else:
        mask_ref = None
        x_ref, att_ref = rest

    inv_scale = 1.0 / scale
    q = q_ref[0].astype(jnp.float32) * inv_scale      # (tq, D), scale folded in
    k = k_ref[0].astype(jnp.float32)                  # (Lk, D)
    v = v_ref[0]                                      # (Lk, Dv)

    # scores = (q * 1/scale) @ k^T, contracting on D without materializing k.T
    s = lax.dot_general(q, k, (((1,), (1,)), ((), ())),
                        preferred_element_type=jnp.float32)
    if has_mask:
        s = s + mask_ref[0].astype(jnp.float32)

    # numerically-stable softmax over last axis (f32), then +1e-5 (matches torch)
    s_max = jnp.max(s, axis=-1, keepdims=True)
    e = jnp.exp(s - s_max)
    denom = jnp.sum(e, axis=-1, keepdims=True)
    att = e * pl.reciprocal(denom, approx=False) + 1e-5

    att_ref[0] = att.astype(att_ref.dtype)
    x_ref[0] = jnp.dot(att.astype(v.dtype), v,
                       preferred_element_type=jnp.float32).astype(x_ref.dtype)


def scaled_dot_product_attention(q, k, v, additive_mask=None, *, dim=None,
                                 tq_max=256):
    """Pallas equivalent of ScaledDotProductAttention.forward."""
    B, Lq, D = q.shape
    _, Lk, _ = k.shape
    _, _, Dv = v.shape
    if dim is None:
        dim = D
    scale = math.sqrt(dim) * 10.0

    # Query-tile size: full Lq when small; otherwise a multiple-of-8 tile
    # bounded by tq_max (<= 256 keeps the resident (tq, Lk) score tile within
    # v7x's smaller VMEM budget).
    if Lq <= tq_max:
        tq = Lq
    else:
        tq = tq_max - (tq_max % 8) if (tq_max % 8) else tq_max

    has_mask = additive_mask is not None
    kernel = functools.partial(_sdpa_kernel, scale=scale, has_mask=has_mask)

    grid = (B, pl.cdiv(Lq, tq))

    in_specs = [
        pl.BlockSpec((1, tq, D), lambda b, i: (b, i, 0)),
        pl.BlockSpec((1, Lk, D), lambda b, i: (b, 0, 0)),   # k resident per batch
        pl.BlockSpec((1, Lk, Dv), lambda b, i: (b, 0, 0)),  # v resident per batch
    ]
    inputs = [q, k, v]
    if has_mask:
        in_specs.append(pl.BlockSpec((1, tq, Lk), lambda b, i: (b, i, 0)))
        inputs.append(additive_mask)

    out_specs = [
        pl.BlockSpec((1, tq, Dv), lambda b, i: (b, i, 0)),
        pl.BlockSpec((1, tq, Lk), lambda b, i: (b, i, 0)),
    ]

    x, att = pl.pallas_call(
        kernel,
        out_shape=(
            jax.ShapeDtypeStruct((B, Lq, Dv), q.dtype),
            jax.ShapeDtypeStruct((B, Lq, Lk), q.dtype),
        ),
        grid_spec=pltpu.PrefetchScalarGridSpec(
            num_scalar_prefetch=0,
            grid=grid,
            in_specs=in_specs,
            out_specs=out_specs,
        ),
        compiler_params=pltpu.CompilerParams(
            dimension_semantics=("parallel", "parallel"),
            vmem_limit_bytes=64 * 1024 * 1024,
        ),
    )(*inputs)
    return x, att


def _reference(q, k, v, additive_mask, dim):
    scale = math.sqrt(dim) * 10.0
    s = jnp.einsum("bqd,bkd->bqk", q, k) / scale
    if additive_mask is not None:
        s = s + additive_mask
    att = jax.nn.softmax(s, axis=-1) + 1e-5
    x = jnp.einsum("bqk,bkd->bqd", att, v)
    return x, att


if __name__ == "__main__":
    B, Lq, Lk, D, Dv = 2, 8, 8, 32, 32

    key = jax.random.PRNGKey(0)
    kq, kk, kv, km = jax.random.split(key, 4)
    q = jax.random.normal(kq, (B, Lq, D), dtype=jnp.float32)
    k = jax.random.normal(kk, (B, Lk, D), dtype=jnp.float32)
    v = jax.random.normal(kv, (B, Lk, Dv), dtype=jnp.float32)
    mask = jax.random.normal(km, (B, Lq, Lk), dtype=jnp.float32) * 0.1

    # with additive mask
    x, att = scaled_dot_product_attention(q, k, v, mask, dim=D)
    jax.block_until_ready((x, att))

    # without mask (specialized kernel: no mask input at all)
    x2, att2 = scaled_dot_product_attention(q, k, v, None, dim=D)
    jax.block_until_ready((x2, att2))

    # check against pure-JAX reference
    xr, attr = _reference(q, k, v, mask, D)
    assert jnp.allclose(x, xr, atol=1e-5, rtol=1e-5)
    assert jnp.allclose(att, attr, atol=1e-5, rtol=1e-5)
    xr2, attr2 = _reference(q, k, v, None, D)
    assert jnp.allclose(x2, xr2, atol=1e-5, rtol=1e-5)
    assert jnp.allclose(att2, attr2, atol=1e-5, rtol=1e-5)

    print("KERNEL_OK")
</pallas_src>

<mosaic_0001>
module attributes {stable_mosaic.version = 11 : i64} {
  func.func @_sdpa_kernel(%arg0: i32, %arg1: i32, %arg2: memref<1x8x32xf32, #tpu.memory_space<vmem>>, %arg3: memref<1x8x32xf32, #tpu.memory_space<vmem>>, %arg4: memref<1x8x32xf32, #tpu.memory_space<vmem>>, %arg5: memref<1x8x8xf32, #tpu.memory_space<vmem>>, %arg6: memref<1x8x32xf32, #tpu.memory_space<vmem>>, %arg7: memref<1x8x8xf32, #tpu.memory_space<vmem>>) attributes {dimension_semantics = [#tpu.dimension_semantics<parallel>, #tpu.dimension_semantics<parallel>], iteration_bounds = array<i64: 2, 1>, scalar_prefetch = 0 : i64, scratch_operands = 0 : i64, tpu.core_type = #tpu.core_type<tc>, window_params = [{transform_indices = @transform_0, window_bounds = array<i64: 1, 8, 32>}, {transform_indices = @transform_1, window_bounds = array<i64: 1, 8, 32>}, {transform_indices = @transform_2, window_bounds = array<i64: 1, 8, 32>}, {transform_indices = @transform_3, window_bounds = array<i64: 1, 8, 8>}, {transform_indices = @transform_4, window_bounds = array<i64: 1, 8, 32>}, {transform_indices = @transform_5, window_bounds = array<i64: 1, 8, 8>}]} {
    %c0 = arith.constant 0 : index
    %c0_0 = arith.constant 0 : index
    %c0_1 = arith.constant 0 : index
    %0 = vector.load %arg2[%c0, %c0_0, %c0_1] : memref<1x8x32xf32, #tpu.memory_space<vmem>>, vector<1x8x32xf32>
    %1 = vector.shape_cast %0 : vector<1x8x32xf32> to vector<8x32xf32>
    %cst = arith.constant 0.0176776703 : f32
    %2 = vector.broadcast %cst : f32 to vector<8x32xf32>
    %3 = arith.mulf %1, %2 : vector<8x32xf32>
    %c0_2 = arith.constant 0 : index
    %c0_3 = arith.constant 0 : index
    %c0_4 = arith.constant 0 : index
    %4 = vector.load %arg3[%c0_2, %c0_3, %c0_4] : memref<1x8x32xf32, #tpu.memory_space<vmem>>, vector<1x8x32xf32>
    %5 = vector.shape_cast %4 : vector<1x8x32xf32> to vector<8x32xf32>
    %c0_5 = arith.constant 0 : index
    %c0_6 = arith.constant 0 : index
    %c0_7 = arith.constant 0 : index
    %6 = vector.load %arg4[%c0_5, %c0_6, %c0_7] : memref<1x8x32xf32, #tpu.memory_space<vmem>>, vector<1x8x32xf32>
    %7 = vector.shape_cast %6 : vector<1x8x32xf32> to vector<8x32xf32>
    %cst_8 = arith.constant dense<0.000000e+00> : vector<8x8xf32>
    %8 = tpu.matmul %3, %5, %cst_8 {dimension_numbers = #tpu.dot_dimension_numbers<[1], [1], [0], [0], [0, 0, 1, 0], [], []>} : vector<8x32xf32>, vector<8x32xf32>, vector<8x8xf32> -> vector<8x8xf32>
    %c0_9 = arith.constant 0 : index
    %c0_10 = arith.constant 0 : index
    %c0_11 = arith.constant 0 : index
    %9 = vector.load %arg5[%c0_9, %c0_10, %c0_11] : memref<1x8x8xf32, #tpu.memory_space<vmem>>, vector<1x8x8xf32>
    %10 = vector.shape_cast %9 : vector<1x8x8xf32> to vector<8x8xf32>
    %11 = arith.addf %8, %10 : vector<8x8xf32>
    %cst_12 = arith.constant dense<0xFF800000> : vector<8xf32>
    %12 = vector.multi_reduction <maximumf>, %11, %cst_12 [1] : vector<8x8xf32> to vector<8xf32>
    %13 = vector.shape_cast %12 : vector<8xf32> to vector<8x1xf32>
    %14 = vector.broadcast %13 : vector<8x1xf32> to vector<8x8xf32>
    %15 = arith.subf %11, %14 : vector<8x8xf32>
    %16 = math.exp %15 : vector<8x8xf32>
    %cst_13 = arith.constant dense<0.000000e+00> : vector<8xf32>
    %17 = vector.multi_reduction <add>, %16, %cst_13 [1] : vector<8x8xf32> to vector<8xf32>
    %18 = vector.shape_cast %17 : vector<8xf32> to vector<8x1xf32>
    %19 = tpu.reciprocal %18 : vector<8x1xf32> -> vector<8x1xf32>
    %20 = vector.broadcast %19 : vector<8x1xf32> to vector<8x8xf32>
    %21 = arith.mulf %16, %20 : vector<8x8xf32>
    %cst_14 = arith.constant 9.99999974E-6 : f32
    %22 = vector.broadcast %cst_14 : f32 to vector<8x8xf32>
    %23 = arith.addf %21, %22 : vector<8x8xf32>
    %c0_15 = arith.constant 0 : index
    %c0_16 = arith.constant 0 : index
    %c0_17 = arith.constant 0 : index
    %24 = vector.load %arg7[%c0_15, %c0_16, %c0_17] : memref<1x8x8xf32, #tpu.memory_space<vmem>>, vector<1x8x8xf32>
    %25 = vector.shape_cast %24 : vector<1x8x8xf32> to vector<8x8xf32>
    %26 = vector.shape_cast %23 : vector<8x8xf32> to vector<1x8x8xf32>
    tpu.vector_store %arg7[%c0_15, %c0_16, %c0_17], %26 {strides = array<i32>} : memref<1x8x8xf32, #tpu.memory_space<vmem>>, vector<1x8x8xf32>,
    %cst_18 = arith.constant dense<0.000000e+00> : vector<8x32xf32>
    %27 = tpu.matmul %23, %7, %cst_18 {dimension_numbers = #tpu.dot_dimension_numbers<[1], [0], [0], [1], [0, 0, 1, 1], [], []>} : vector<8x8xf32>, vector<8x32xf32>, vector<8x32xf32> -> vector<8x32xf32>
    %c0_19 = arith.constant 0 : index
    %c0_20 = arith.constant 0 : index
    %c0_21 = arith.constant 0 : index
    %28 = vector.load %arg6[%c0_19, %c0_20, %c0_21] : memref<1x8x32xf32, #tpu.memory_space<vmem>>, vector<1x8x32xf32>
    %29 = vector.shape_cast %28 : vector<1x8x32xf32> to vector<8x32xf32>
    %30 = vector.shape_cast %27 : vector<8x32xf32> to vector<1x8x32xf32>
    tpu.vector_store %arg6[%c0_19, %c0_20, %c0_21], %30 {strides = array<i32>} : memref<1x8x32xf32, #tpu.memory_space<vmem>>, vector<1x8x32xf32>,
    return
  }
  func.func @transform_0(%arg0: i32, %arg1: i32) -> (i32, i32, i32) {
    %c0_i32 = arith.constant 0 : i32
    %c0_i32_0 = arith.constant 0 : i32
    return %arg0, %arg1, %c0_i32 : i32, i32, i32
  }
  func.func @transform_1(%arg0: i32, %arg1: i32) -> (i32, i32, i32) {
    %c0_i32 = arith.constant 0 : i32
    %c0_i32_0 = arith.constant 0 : i32
    %c0_i32_1 = arith.constant 0 : i32
    return %arg0, %c0_i32, %c0_i32_0 : i32, i32, i32
  }
  func.func @transform_2(%arg0: i32, %arg1: i32) -> (i32, i32, i32) {
    %c0_i32 = arith.constant 0 : i32
    %c0_i32_0 = arith.constant 0 : i32
    %c0_i32_1 = arith.constant 0 : i32
    return %arg0, %c0_i32, %c0_i32_0 : i32, i32, i32
  }
  func.func @transform_3(%arg0: i32, %arg1: i32) -> (i32, i32, i32) {
    %c0_i32 = arith.constant 0 : i32
    %c0_i32_0 = arith.constant 0 : i32
    return %arg0, %arg1, %c0_i32 : i32, i32, i32
  }
  func.func @transform_4(%arg0: i32, %arg1: i32) -> (i32, i32, i32) {
    %c0_i32 = arith.constant 0 : i32
    %c0_i32_0 = arith.constant 0 : i32
    return %arg0, %arg1, %c0_i32 : i32, i32, i32
  }
  func.func @transform_5(%arg0: i32, %arg1: i32) -> (i32, i32, i32) {
    %c0_i32 = arith.constant 0 : i32
    %c0_i32_0 = arith.constant 0 : i32
    return %arg0, %arg1, %c0_i32 : i32, i32, i32
  }
}

</mosaic_0001>

<bundles_post_ra>
// kernel: tpu_custom_call.1
= control target key start
LH: loop header
LB: loop body
LE: loop exit
PB: predicated region body
PF: predicated region fallthrough
CT: control target
= control target key end

     0   :  { %s1509_s0 = inlined_call_operand.hbm [shape: f32[2,8,32], index: 0, kind: input, shape index: {}]   ;;  %s1510_s1 = inlined_call_operand.hbm [shape: f32[2,8,32], index: 1, kind: input, shape index: {}]   ;;  %s1511_s2 = inlined_call_operand.hbm [shape: f32[2,8,32], index: 2, kind: input, shape index: {}]   ;;  %s1512_s3 = inlined_call_operand.hbm [shape: f32[2,8,8], index: 3, kind: input, shape index: {}]   ;;  %s1513_s4 = inlined_call_operand.hbm [shape: f32[2,8,32], index: 4, kind: output, shape index: {0}]   ;;  %s1514_s5 = inlined_call_operand.hbm [shape: f32[2,8,8], index: 5, kind: output, shape index: {1}]  }
   0x1   :  { %1525 = sst [smem:[#allocation24_spill]] %s1510_s1 }
   0x2   :  { %11 = vsyncpa [#allocation3], 0 }
   0x3   :  { %13 = vsyncpa [#allocation3 + $0x1], 0 }
   0x4   :  { %14 = vsyncpa [#allocation6], 0 }
   0x5   :  { %16 = vsyncpa [#allocation6 + $0x1], 0 }
   0x6   :  { %17 = vsyncpa [#allocation9], 0 }
   0x7   :  { %19 = vsyncpa [#allocation9 + $0x1], 0 }
   0x8   :  { %20 = vsyncpa [#allocation4], 0 }
   0x9   :  { %22 = vsyncpa [#allocation4 + $0x1], 0 }
   0xa   :  { %23 = vsyncpa [#allocation12], 0 }
   0xb   :  { %25 = vsyncpa [#allocation12 + $0x1], 0  ;;  %s1177_s18 = smov 0   ;;  %s1179_s19 = smov 0  }
   0xc   :  { %s1181_s20 = smov 0   ;;  %s1183_s21 = smov 0  }
   0xd   :  { %s1185_s22 = smov 0   ;;  %s1187_s23 = smov 0  }
   0xe LB: > { %1526 = sst [smem:[#allocation18_spill]] %s1125_s20  ;;  %s1208_s24 = sadd.s32 4294967295, %s1137_s23   ;;  %s1137_s23 = sphi %s1187_s23, %s31_s23   ;;  %s1133_s22 = sphi %s1185_s22, %s1554_s22   ;;  %s1129_s21 = sphi %s1183_s21, %s1553_s21   ;;  %s1125_s20 = sphi %s1181_s20, %s1552_s20   ;;  %s1121_s19 = sphi %s1179_s19, %s1556_s19   ;;  %s1117_s18 = sphi %s1177_s18, %s1555_s18  }
   0xf   : > { %1527 = sst [smem:[#allocation19_spill]] %s1133_s22  ;;  %s766_s25 = sadd.s32 4294967294, %s1137_s23  }
  0x10   : > { %1528 = sst [smem:[#allocation20_spill]] %s1137_s23  ;;  %s43_s26 = sadd.s32 1, %s1133_s22 }
  0x11   : > { %s52_s27 = sadd.s32 1, %s1125_s20  ;;  %p45_p0 = scmp.ge.s32.totalorder %s43_s26, 2 }
  0x12   : > { %p59_p1 = scmp.ne.s32.totalorder %s1125_s20, %s1121_s19  ;;  %p60_p2 = scmp.eq.s32.totalorder %s1137_s23, 0 }
  0x13   : > { %p65_p3 = scmp.ne.s32.totalorder %s1121_s19, %s1117_s18  ;;  %s1558_s26 = smov (%p45_p0, %s43_s26), 0 }
  0x14   : > { %1529 = sst [smem:[#allocation21_spill]] %s1558_s26  ;;  %p1220_p4 = por %p60_p2, %p59_p1 }
  0x15   : > { %p66_p5 = scmp.eq.s32.totalorder %s1208_s24, 0  ;;  %s47_s29 = ssub.s32 %s1133_s22, %s1558_s26 }
  0x16   : > { %p171_p6 = scmp.eq.s32.totalorder %s1208_s24, 1  ;;  %p50_p7 = scmp.eq.s32.totalorder %s47_s29, 0 }
  0x17   : > { %p1228_p8 = por %p66_p5, %p65_p3  ;;  %p177_p10 = scmp.eq.s32.totalorder %s766_s25, 1 }
  0x18   : > { %p1232_p9 = por %p171_p6, %p59_p1  ;;  %p839_p13 = scmp.lt.s32.totalorder %s1137_s23, 2 }
  0x19   : > { %s1531_s30 = scalar_select %p1228_p8, 1, 0 }
  0x1a   : > { %s1532_s6 = scalar_select %p1232_p9, 1, 0 }
  0x1b   : > { %s1237_s7 = scalar_select %p50_p7, %s1125_s20, %s52_s27  }
  0x1c   : > { %p1239_p11 = por %p177_p10, %p65_p3  ;;  %s1246_s9 = sand.u32 1, %s1125_s20  }
  0x1d   : > { %1533 = sst [smem:[#allocation22_spill]] %s1237_s7  ;;  %s1249_s10 = sshll.u32 %s1246_s9, 3 }
  0x1e   : > { %s1534_s8 = scalar_select %p1239_p11, 1, 0 }
  0x1f   : > { %s1252_s11 = sshll.u32 %s1133_s22, 7  ;;  %p1256_p0 = pnand %p839_p13, %p1220_p4 }
  0x20   : > { %1535 = sst [smem:[#allocation23_spill]] %s1534_s8  ;;  %s244_s13 = sand.u32 1, %s1137_s23  }
  0x21   : > { %s1536_s12 = scalar_select %p1256_p0, 1, 0 }
  0x22   : > { %s1537_s1 = sld [smem:[#allocation24_spill]]  ;;  %s248_s17 = scalar_lea.vmem [#allocation5], %s1249_s10 }
  0x23   : > { %s255_s25 = sshll.u32 %s248_s17, 4  ;;  %s1272_s27 = scalar_lea.sflag [#allocation6], %s244_s13  ;;  %s1269_s25 = int_to_ptr.vmem [resolvable:$true] %s255_s25 }
  0x24   : > { %p1278_p4 = pneg %p1256_p0 }
  0x28   : > { %s1265_s16 = scalar_lea.hbm %s1537_s1, %s1252_s11  ;;  %s900_s17 = scalar_lea.hbm %s1537_s1, 256 }
  0x29   : > { %s895_s28 = scalar_lea.hbm %s1265_s16, 128  ;;  %p901_p7 = scmp.lt.u32.totalorder %s1265_s16, %s1537_s1 }
  0x2a   : > { %p896_p3 = scmp.ne.s32.totalorder %s1265_s16, %s895_s28  ;;  %p902_p10 = scmp.lt.u32.totalorder %s900_s17, %s895_s28 }
  0x2b   : > { %p904_p12 = scmp.lt.u32.totalorder %s895_s28, %s1265_s16 }
  0x2c   : > { %p898_p5 = pnand %p1278_p4, %p896_p3  ;;  %p903_p13 = por %p902_p10, %p901_p7 }
  0x2e   : > { %p899_p6 = pneg %p898_p5  ;;  %p905_p1 = por %p904_p12, %p903_p13 }
  0x30   : > { %p906_p2 = pnand %p905_p1, %p899_p6 }
  0x32   : > { %909 = shalt.err (!%p906_p2)
}
  0x33   : > { %s910_s13 = scalar_lea.vmem %s1269_s25, 128  ;;  %s1139_s14 = smov [#allocation5]  }
  0x34   : > { %p911_p3 = scmp.ne.s32.totalorder %s1269_s25, %s910_s13  ;;  %s915_s15 = sshll.u32 %s1139_s14, 4  ;;  %s916_s15 = int_to_ptr.vmem [resolvable:$false] %s915_s15 }
  0x35   : > { %s917_s22 = scalar_lea.vmem %s916_s15, 256  ;;  %p918_p9 = scmp.lt.s32.totalorder %s1269_s25, %s916_s15 }
  0x36   : > { %p913_p5 = pnand %p911_p3, %p1278_p4  ;;  %p919_p8 = scmp.lt.s32.totalorder %s917_s22, %s910_s13 }
  0x38   : > { %p914_p11 = pneg %p913_p5  ;;  %p920_p7 = por %p919_p8, %p918_p9 }
  0x3a   : > { %p921_p10 = pnand %p920_p7, %p914_p11 }
  0x3c   : > { %924 = shalt.err (!%p921_p10)
}
  0x3d   : > { %825 = dma.hbm_to_vmem [thread:$0]  (!%p1256_p0), %s1265_s16, 128, %s1269_s25, %s1272_s27  }
  0x3e   : > { %p1539_p12 = scmp.lt.s32.totalorder %s1137_s23, 3  ;;  %p1540_p1 = scmp.ge.s32.totalorder %s1137_s23, 1 }
  0x3f   : > { %s1314_s13 = scalar_lea.hbm %s1509_s0, %s1252_s11  ;;  %s229_s14 = scalar_lea.vmem [#allocation2], %s1249_s10 }
  0x40   : > { %p1306_p2 = pnand %p1540_p1, %p1539_p12  ;;  %s237_s15 = sshll.u32 %s229_s14, 4  ;;  %s1317_s15 = int_to_ptr.vmem [resolvable:$true] %s237_s15 }
  0x41   : > { %s1323_s22 = scalar_lea.hbm %s1511_s2, %s1252_s11  ;;  %s226_s1 = scalar_lea.sflag [#allocation3], %s1246_s9 }
  0x42   : > { %s1541_s26 = scalar_select %p1306_p2, 1, 0 }
  0x43   : > { %s925_s7 = scalar_lea.hbm %s1314_s13, 128  ;;  %s930_s20 = scalar_lea.hbm %s1509_s0, 256 }
  0x44   : > { %p926_p8 = scmp.ne.s32.totalorder %s1314_s13, %s925_s7  ;;  %p931_p6 = scmp.lt.u32.totalorder %s1314_s13, %s1509_s0 }
  0x45   : > { %p932_p13 = scmp.lt.u32.totalorder %s930_s20, %s925_s7  ;;  %p934_p5 = scmp.lt.u32.totalorder %s925_s7, %s1314_s13 }
  0x46   : > { %p928_p9 = pnand %p926_p8, %p1278_p4 }
  0x47   : > { %p933_p3 = por %p932_p13, %p931_p6 }
  0x48   : > { %p929_p11 = pneg %p928_p9 }
  0x49   : > { %p935_p7 = por %p934_p5, %p933_p3 }
  0x4b   : > { %p936_p10 = pnand %p935_p7, %p929_p11 }
  0x4d   : > { %939 = shalt.err (!%p936_p10)
}
  0x4e   : > { %s940_s14 = scalar_lea.vmem %s1317_s15, 128  ;;  %s1140_s16 = smov [#allocation2]  }
  0x4f   : > { %p941_p12 = scmp.ne.s32.totalorder %s1317_s15, %s940_s14  ;;  %s945_s25 = sshll.u32 %s1140_s16, 4  ;;  %s946_s25 = int_to_ptr.vmem [resolvable:$false] %s945_s25 }
  0x50   : > { %s947_s23 = scalar_lea.vmem %s946_s25, 256  ;;  %p948_p9 = scmp.lt.s32.totalorder %s1317_s15, %s946_s25 }
  0x51   : > { %p943_p1 = pnand %p941_p12, %p1278_p4  ;;  %p949_p2 = scmp.lt.s32.totalorder %s947_s23, %s940_s14 }
  0x53   : > { %p944_p8 = pneg %p943_p1  ;;  %p950_p6 = por %p949_p2, %p948_p9 }
  0x55   : > { %p951_p13 = pnand %p950_p6, %p944_p8 }
  0x57   : > { %954 = shalt.err (!%p951_p13)
}
  0x58   : > { %822 = dma.hbm_to_vmem [thread:$0]  (!%p1256_p0), %s1314_s13, 128, %s1317_s15, %s226_s1  }
  0x59   : > { %s266_s20 = scalar_lea.vmem [#allocation7], %s1249_s10  ;;  %s955_s8 = scalar_lea.hbm %s1323_s22, 128 }
  0x5a   : > { %s273_s7 = sshll.u32 %s266_s20, 4  ;;  %p956_p11 = scmp.ne.s32.totalorder %s1323_s22, %s955_s8  ;;  %s274_s7 = int_to_ptr.vmem [resolvable:$true] %s273_s7 }
  0x5b   : > { %s960_s14 = scalar_lea.hbm %s1511_s2, 256  ;;  %p961_p5 = scmp.lt.u32.totalorder %s1323_s22, %s1511_s2 }
  0x5c   : > { %p958_p2 = pnand %p956_p11, %p1278_p4  ;;  %p962_p7 = scmp.lt.u32.totalorder %s960_s14, %s955_s8 }
  0x5d   : > { %p964_p12 = scmp.lt.u32.totalorder %s955_s8, %s1323_s22 }
  0x5e   : > { %p959_p3 = pneg %p958_p2  ;;  %p963_p10 = por %p962_p7, %p961_p5 }
  0x60   : > { %p965_p1 = por %p964_p12, %p963_p10 }
  0x62   : > { %p966_p8 = pnand %p965_p1, %p959_p3 }
  0x64   : > { %969 = shalt.err (!%p966_p8)
}
  0x65   : > { %s970_s1 = scalar_lea.vmem %s274_s7, 128  ;;  %s1141_s13 = smov [#allocation7]  }
  0x66   : > { %p971_p9 = scmp.ne.s32.totalorder %s274_s7, %s970_s1  ;;  %s975_s15 = sshll.u32 %s1141_s13, 4  ;;  %s976_s15 = int_to_ptr.vmem [resolvable:$false] %s975_s15 }
  0x67   : > { %s977_s23 = scalar_lea.vmem %s976_s15, 256  ;;  %p978_p11 = scmp.lt.s32.totalorder %s274_s7, %s976_s15 }
  0x68   : > { %p973_p6 = pnand %p971_p9, %p1278_p4  ;;  %p979_p2 = scmp.lt.s32.totalorder %s977_s23, %s970_s1 }
  0x6a   : > { %p974_p13 = pneg %p973_p6  ;;  %p980_p0 = por %p979_p2, %p978_p11 }
  0x6c   : > { %p981_p5 = pnand %p980_p0, %p974_p13 }
  0x6e   : > { %984 = shalt.err (!%p981_p5)
}
  0x6f   : > { %p1542_p7 = scmp.ne.s32.totalorder %s1536_s12, 0  ;;  %s1370_s28 = scalar_lea.hbm %s1512_s3, %s1252_s11 }
  0x70   : > { %s284_s17 = scalar_lea.vmem [#allocation8], %s1249_s10  ;;  %s281_s16 = scalar_lea.sflag [#allocation9], %s1246_s9 }
  0x71   : > { %828 = dma.hbm_to_vmem [thread:$0]  (!%p1542_p7), %s1323_s22, 128, %s274_s7, %s1272_s27  }
  0x72   : > { %s292_s14 = sshll.u32 %s284_s17, 4  ;;  %s985_s25 = scalar_lea.hbm %s1370_s28, 128  ;;  %s293_s14 = int_to_ptr.vmem [resolvable:$true] %s292_s14 }
  0x73   : > { %p986_p0 = scmp.ne.s32.totalorder %s1370_s28, %s985_s25  ;;  %s990_s22 = scalar_lea.hbm %s1512_s3, 256 }
  0x74   : > { %p991_p12 = scmp.lt.u32.totalorder %s1370_s28, %s1512_s3  ;;  %p992_p1 = scmp.lt.u32.totalorder %s990_s22, %s985_s25 }
  0x75   : > { %p988_p3 = pnand %p986_p0, %p1278_p4  ;;  %p994_p9 = scmp.lt.u32.totalorder %s985_s25, %s1370_s28 }
  0x76   : > { %p993_p8 = por %p992_p1, %p991_p12 }
  0x77   : > { %p989_p10 = pneg %p988_p3 }
  0x78   : > { %p995_p6 = por %p994_p9, %p993_p8 }
  0x7a   : > { %p996_p13 = pnand %p995_p6, %p989_p10 }
  0x7c   : > { %999 = shalt.err (!%p996_p13)
}
  0x7d   : > { %s1000_s9 = scalar_lea.vmem %s293_s14, 128  ;;  %s1142_s10 = smov [#allocation8]  }
  0x7e   : > { %p1001_p11 = scmp.ne.s32.totalorder %s293_s14, %s1000_s9  ;;  %s1005_s13 = sshll.u32 %s1142_s10, 4  ;;  %s1006_s13 = int_to_ptr.vmem [resolvable:$false] %s1005_s13 }
  0x7f   : > { %s1007_s15 = scalar_lea.vmem %s1006_s13, 256  ;;  %p1008_p0 = scmp.lt.s32.totalorder %s293_s14, %s1006_s13 }
  0x80   : > { %p1003_p2 = pnand %p1001_p11, %p1278_p4  ;;  %p1009_p3 = scmp.lt.s32.totalorder %s1007_s15, %s1000_s9 }
  0x82   : > { %p1004_p5 = pneg %p1003_p2  ;;  %p1010_p7 = por %p1009_p3, %p1008_p0 }
  0x84   : > { %p1011_p1 = pnand %p1010_p7, %p1004_p5 }
  0x86   : > { %1014 = shalt.err (!%p1011_p1)
}
  0x87   : > { %p1543_p12 = scmp.ne.s32.totalorder %s1536_s12, 0  ;;  %p1544_p10 = scmp.ne.s32.totalorder %s1541_s26, 0 }
  0x88   : > { %s1394_s29 = sand.u32 (!%p1544_p10), 1, %s1121_s19   ;;  %p1545_p4 = scmp.ne.s32.totalorder (!%p1544_p10), %s1531_s30, 0 }
  0x89   : > { %831 = dma.hbm_to_vmem [thread:$0]  (!%p1543_p12), %s1370_s28, 128, %s293_s14, %s281_s16  }
  0x8a   : > { %301 = sbr.rel (%p1544_p10) target bundleno = 914 (0x392), region = 36  ;;  %s1397_s23 = sshll.u32 (!%p1544_p10), %s1394_s29, 3 }
  0x8b   : > { %s304_s20 = scalar_lea.sflag (!%p1544_p10), [#allocation3], %s1394_s29  ;;  %s307_s8 = scalar_lea.vmem (!%p1544_p10), [#allocation2], %s1397_s23 }
  0x91   : > { %1096 = dma.done.wait (%p1545_p4), %s304_s20, 128  }
  0x92   : > { %1098 = vsyncadd (%p1545_p4), %s304_s20, 4294967168  ;;  %s312_s12 = sand.u32 1, %s1208_s24   ;;  %s316_s28 = scalar_lea.vmem [#allocation5], %s1397_s23 }
  0x93   : > { %s313_s26 = scalar_lea.sflag [#allocation6], %s312_s12 }
  0x94   : > { %1100 = dma.done.wait (%p1545_p4), %s313_s26, 256  }
  0x95   : > { %1102 = vsyncadd (%p1545_p4), %s313_s26, 4294967040  ;;  %s325_s17 = scalar_lea.vmem [#allocation7], %s1397_s23  ;;  %s331_s14 = scalar_lea.sflag [#allocation9], %s1394_s29 }
  0x96   : > { %s334_s16 = scalar_lea.vmem [#allocation8], %s1397_s23 }
  0x97   : > { %1104 = dma.done.wait (%p1545_p4), %s331_s14, 128  }
  0x98   : > { %1106 = vsyncadd (%p1545_p4), %s331_s14, 4294967168  ;;  %v1143_v0 = vmov 0.0   ;;  %vm1144_vm0 = vmmov 0   ;;  %vm386_vm1 = vcmask 261120   ;;  %v383_v1 = vld [vmem:[%s316_s28] sm:$0xff]  ;;  %v381_v2 = vld [vmem:[%s307_s8] sm:$0xff] }
  0x99   : > { %797 = vmatprep.subr.mxu0 %v1143_v0  ;;  %799 = vmatprep.mubr.msk.f32.mxu0 %vm1144_vm0, %v1143_v0  ;;  %v382_v3 = vmul.f32 0.01767767, %v381_v2  ;;  %v385_v4 = vld [vmem:[%s334_s16] sm:$0xff]  ;;  %vm463_vm2 = vcmask 64512   ;;  %v384_v14 = vld [vmem:[%s325_s17] sm:$0xff]  ;;  %s380_s24 = scalar_lea.vmem [#allocation11], %s1397_s23 }
  0x9a   : > { %802 = vmatprep.subr.mxu1 %v1143_v0  ;;  %804 = vmatprep.mubr.msk.f32.mxu1 %vm1144_vm0, %v1143_v0  ;;  %s789_s30 = sshll.u32 %s1129_s21, 7  ;;  %s585_s22 = sshll.u32 %s380_s24, 4  ;;  %s586_s22 = int_to_ptr.vmem [resolvable:$true] %s585_s22 }
  0x9b   : > { %798 = vmatpush3.xpose.msk.msra.mxu0 %vm386_vm1, %v383_v1  ;;  %803 = vmatpush3.msra.mxu1 %v384_v14  ;;  %s1433_s27 = scalar_lea.hbm %s1514_s5, %s789_s30  ;;  %s557_s7 = scalar_lea.sflag [#allocation12], %s1394_s29 }
  0x9c   : > { %s1015_s11 = scalar_lea.vmem %s586_s22, 128  ;;  %p1546_p8 = scmp.ne.s32.totalorder %s1532_s6, 0 }
  0x9d   : > { %p1016_p7 = scmp.ne.s32.totalorder %s586_s22, %s1015_s11  ;;  %s1145_s9 = smov [#allocation11]  }
  0x9e   : > { %800 = vmatmul.mubr.msk.f32.vlgmr.msra.gmra.mrb[0].mxu0 %vm386_vm1, %v382_v3  ;;  %s1019_s10 = sshll.u32 %s1145_s9, 4  ;;  %s1020_s10 = int_to_ptr.vmem [resolvable:$false] %s1019_s10 }
  0x9f   : > { %p1017_p9 = pnand %p1016_p7, %p1546_p8  ;;  %s1021_s13 = scalar_lea.vmem %s1020_s10, 256 }
  0xa0   : > { %p1022_p13 = scmp.lt.s32.totalorder %s586_s22, %s1020_s10  ;;  %p1023_p11 = scmp.lt.s32.totalorder %s1021_s13, %s1015_s11 }
  0xa1   : > { %p1018_p6 = pneg %p1017_p9 }
  0xa2   : > { %p1024_p2 = por %p1023_p11, %p1022_p13 }
  0xa4   : > { %p1025_p5 = pnand %p1024_p2, %p1018_p6 }
 0x171   : > { %v459_v5 = vpop.f32.mrb[0].mxu0 }
 0x172   : > { %v460_v6 = vadd.f32 %v459_v5, %v385_v4  ;;  %v801_v7 = vpop.f32.mrb[1].mxu0 }
 0x174   : > { %v464_v8 = vsel %vm463_vm2, %v460_v6, -inf }
 0x175   : > { %465 = vmax.xlane.f32.xlu0 %v464_v8 }
 0x202   : > { %v466_v9 = vpop.xlane.xlu0 %465 }
 0x203   : > { %v467_v10 = vsub.f32 %v460_v6, %v466_v9 }
 0x205   : > { %v468_v11 = vmul.f32 1.442695, %v467_v10 }
 0x207   : > { %891 = vpow2.f32 %v468_v11 }
 0x211   : > { %v892_v12 = vpop.eup %891 }
 0x212   : > { %v470_v13 = vsel %vm463_vm2, %v892_v12, 0.0 }
 0x213   : > { %471 = vadd.xlane.f32.xlu0 %v470_v13 }
 0x2a0   : > { %v472_v15 = vpop.xlane.xlu0 %471 }
 0x2a1   : > { %893 = vrcp.f32 %v472_v15 }
 0x2ab   : > { %v894_v16 = vpop.eup %893 }
 0x2ac   : > { %v474_v17 = vmul.f32 %v894_v16, %v892_v12 }
 0x2ae   : > { %v475_v18 = vadd.f32 1e-05, %v474_v17 }
 0x2b0   : > { %805 = vmatmul.mubr.msk.f32.vlgmr.msra.gmra.mrb[0].mxu1 %vm463_vm2, %v475_v18  ;;  %476 = vst.msk [vmem:[%s380_s24] sm:$0xff] %vm463_vm2, %v475_v18 }
 0x2b1   : > { %1028 = shalt.err (!%p1025_p5)
}
 0x2b2   : > { %s1029_s15 = scalar_lea.hbm %s1433_s27, 128  ;;  %s1033_s12 = scalar_lea.hbm %s1514_s5, 256 }
 0x2b3   : > { %p1030_p0 = scmp.ne.s32.totalorder %s1433_s27, %s1029_s15  ;;  %p1034_p12 = scmp.lt.u32.totalorder %s1433_s27, %s1514_s5 }
 0x2b4   : > { %p1035_p10 = scmp.lt.u32.totalorder %s1033_s12, %s1029_s15  ;;  %p1037_p7 = scmp.lt.u32.totalorder %s1029_s15, %s1433_s27 }
 0x2b5   : > { %p1031_p3 = pnand %p1030_p0, %p1546_p8 }
 0x2b6   : > { %p1036_p4 = por %p1035_p10, %p1034_p12 }
 0x2b7   : > { %p1032_p1 = pneg %p1031_p3 }
 0x2b8   : > { %p1038_p9 = por %p1037_p7, %p1036_p4 }
 0x2ba   : > { %p1039_p6 = pnand %p1038_p9, %p1032_p1 }
 0x2bc   : > { %1042 = shalt.err (!%p1039_p6)
}
 0x2bd   : > { %816 = dma.vmem_to_hbm [thread:$0]  (%p1546_p8), %s586_s22, 128, %s1433_s27, %s557_s7  }
 0x2be   : > { %s373_s17 = scalar_lea.vmem [#allocation10], %s1397_s23  ;;  %s1459_s25 = scalar_lea.hbm %s1513_s4, %s789_s30 }
 0x2bf   : > { %s571_s14 = sshll.u32 %s373_s17, 4  ;;  %s552_s1 = scalar_lea.sflag [#allocation4], %s1394_s29  ;;  %s1461_s14 = int_to_ptr.vmem [resolvable:$true] %s571_s14 }
 0x2c0   : > { %s1043_s11 = scalar_lea.vmem %s1461_s14, 128  ;;  %s1146_s21 = smov [#allocation10]  }
 0x2c1   : > { %p1044_p13 = scmp.ne.s32.totalorder %s1461_s14, %s1043_s11  ;;  %s1047_s23 = sshll.u32 %s1146_s21, 4  ;;  %s1048_s23 = int_to_ptr.vmem [resolvable:$false] %s1047_s23 }
 0x2c2   : > { %s1049_s30 = scalar_lea.vmem %s1048_s23, 256  ;;  %p1050_p5 = scmp.lt.s32.totalorder %s1461_s14, %s1048_s23 }
 0x2c3   : > { %p1045_p11 = pnand %p1044_p13, %p1546_p8  ;;  %p1051_p0 = scmp.lt.s32.totalorder %s1049_s30, %s1043_s11 }
 0x2c5   : > { %p1046_p2 = pneg %p1045_p11  ;;  %p1052_p3 = por %p1051_p0, %p1050_p5 }
 0x2c7   : > { %p1053_p1 = pnand %p1052_p3, %p1046_p2 }
 0x383   : > { %v546_v19 = vpop.f32.mrb[0].mxu1 }
 0x384   : > { %550 = vst.msk [vmem:[%s373_s17] sm:$0xff] %vm386_vm1, %v546_v19  ;;  %v806_v20 = vpop.f32.mrb[1].mxu1 }
 0x385   : > { %1056 = shalt.err (!%p1053_p1)
}
 0x386   : > { %s1057_s29 = scalar_lea.hbm %s1459_s25, 128  ;;  %s1061_s7 = scalar_lea.hbm %s1513_s4, 256 }
 0x387   : > { %p1058_p12 = scmp.ne.s32.totalorder %s1459_s25, %s1057_s29  ;;  %p1062_p7 = scmp.lt.u32.totalorder %s1459_s25, %s1513_s4 }
 0x388   : > { %p1063_p9 = scmp.lt.u32.totalorder %s1061_s7, %s1057_s29  ;;  %p1065_p13 = scmp.lt.u32.totalorder %s1057_s29, %s1459_s25 }
 0x389   : > { %p1059_p10 = pnand %p1058_p12, %p1546_p8 }
 0x38a   : > { %p1064_p6 = por %p1063_p9, %p1062_p7 }
 0x38b   : > { %p1060_p4 = pneg %p1059_p10 }
 0x38c   : > { %p1066_p11 = por %p1065_p13, %p1064_p6 }
 0x38e   : > { %p1067_p2 = pnand %p1066_p11, %p1060_p4 }
 0x390   : > { %1070 = shalt.err (!%p1067_p2)
}
 0x391   : > { %815 = dma.vmem_to_hbm [thread:$0]  (%p1546_p8), %s1461_s14, 128, %s1459_s25, %s552_s1  }
 0x392 PF: > { %s1547_s13 = sld [smem:[#allocation23_spill]]  ;;  %s1548_s15 = sld [smem:[#allocation20_spill]] }
 0x393   : > { %s597_s20 = sand.u32 1, %s1117_s18  }
 0x394   : > { %s598_s8 = scalar_lea.sflag [#allocation4], %s597_s20 }
 0x398   : > { %p1549_p5 = scmp.ne.s32.totalorder %s1547_s13, 0  ;;  %p1550_p0 = scmp.ge.s32.totalorder %s1548_s15, 2 }
 0x39a   : > { %p833_p3 = pnand %p1550_p0, %p1549_p5 }
 0x39c   : > { %1108 = dma.done.wait (!%p833_p3), %s598_s8, 128  }
 0x39d   : > { %1110 = vsyncadd (!%p833_p3), %s598_s8, 4294967168  ;;  %s607_s12 = scalar_lea.sflag [#allocation12], %s597_s20 }
 0x39e   : > { %1112 = dma.done.wait (!%p833_p3), %s607_s12, 128  }
 0x39f   : > { %1114 = vsyncadd (!%p833_p3), %s607_s12, 4294967168  ;;  %s31_s23 = sadd.s32 1, %s1548_s15   ;;  %s1551_s6 = sld [smem:[#allocation18_spill]] }
 0x3a0   : > { %p28_p1 = scmp.ge.s32.totalorder %s31_s23, 4   ;;  %s1552_s20 = sld [smem:[#allocation22_spill]] }
 0x3a1   : > { %s1553_s21 = sld [smem:[#allocation19_spill]]  ;;  %s1554_s22 = sld [smem:[#allocation21_spill]] }
 0x3a2   : > { %s1555_s18 = smov %s1121_s19  ;;  %30 = sbr.rel (!%p28_p1) target bundleno = 14 (0xe), region = 135 }
 0x3a5   : > { %s1556_s19 = smov %s1551_s6 }
 0x3a9   :  { %612 = vsyncpa [#allocation3], 1 }
 0x3aa   :  { %614 = vsyncpa [#allocation3 + $0x1], 1 }
 0x3ab   :  { %615 = vsyncpa [#allocation6], 1 }
 0x3ac   :  { %617 = vsyncpa [#allocation6 + $0x1], 1 }
 0x3ad   :  { %618 = vsyncpa [#allocation9], 1 }
 0x3ae   :  { %620 = vsyncpa [#allocation9 + $0x1], 1 }
 0x3af   :  { %621 = vsyncpa [#allocation4], 1 }
 0x3b0   :  { %623 = vsyncpa [#allocation4 + $0x1], 1 }
 0x3b1   :  { %624 = vsyncpa [#allocation12], 1 }
 0x3b2   :  { %626 = vsyncpa [#allocation12 + $0x1], 1 }

</bundles_post_ra>
